<compile_context>
chip_gen: v7x
topology: tpu7x:2x2x1
jax: 0.10.0
libtpu: 0.0.40
codegen_flags: <defaults>
</compile_context>

<pallas_src>
import jax
import jax.numpy as jnp
from jax.experimental import pallas as pl
from jax.experimental.pallas import tpu as pltpu


def _rnn_kernel(x_ref,       # (B, T, I)  raw batch-first input
                h_ref,       # (2, B, H)  initial hidden state (layer 0, layer 1)
                w_ih0t_ref,  # (I, H)     W_ih0^T
                w_hh0t_ref,  # (H, H)     W_hh0^T
                w_ih1t_ref,  # (H, H)     W_ih1^T
                w_hh1t_ref,  # (H, H)     W_hh1^T
                b0_ref,      # (1, H)     b_ih0 + b_hh0
                b1_ref,      # (1, H)     b_ih1 + b_hh1
                w_fct_ref,   # (H, O)     W_fc^T
                b_fc_ref,    # (1, O)
                out_ref):    # (B, O)
    B, T, _ = x_ref.shape
    H = w_hh0t_ref.shape[0]

    # Loop-invariant loads / broadcasts hoisted once (JAX does not CSE
    # broadcast_in_dim, so do NOT re-broadcast per step).
    w_ih0t = w_ih0t_ref[...]
    w_hh0t = w_hh0t_ref[...]
    w_ih1t = w_ih1t_ref[...]
    w_hh1t = w_hh1t_ref[...]
    b0 = jnp.broadcast_to(b0_ref[...], (B, H))
    b1 = jnp.broadcast_to(b1_ref[...], (B, H))

    x = x_ref[...]  # (B, T, I) -- a few KB, load once

    # Layer-0 input projections for every timestep (incl. folded biases).
    # They depend only on x, so with the recurrence fully unrolled the
    # scheduler pulls all T of them off the serial critical path.
    xp = [
        jnp.dot(x[:, t, :], w_ih0t, preferred_element_type=jnp.float32) + b0
        for t in range(T)
    ]

    h0 = h_ref[0]  # (B, H)
    h1 = h_ref[1]  # (B, H)

    # Fully unrolled, skewed recurrence.  With the concat removed, layer-1 at
    # step t needs only (h0_t, h1_{t-1}); so h0_{t+1} and h1_t are independent
    # and overlap (one MXU+EUP latency per step instead of two in series).
    h0_next = jnp.tanh(
        xp[0] + jnp.dot(h0, w_hh0t, preferred_element_type=jnp.float32))
    for t in range(T):
        h0 = h0_next
        if t + 1 < T:
            h0_next = jnp.tanh(
                xp[t + 1]
                + jnp.dot(h0, w_hh0t, preferred_element_type=jnp.float32))
        # Layer 1: two accumulating matmuls (no lane-axis concat on the chain).
        h1 = jnp.tanh(
            jnp.dot(h0, w_ih1t, preferred_element_type=jnp.float32)
            + jnp.dot(h1, w_hh1t, preferred_element_type=jnp.float32)
            + b1)

    # Final Linear on the last timestep's top-layer hidden state.
    out_ref[...] = (
        jnp.dot(h1, w_fct_ref[...], preferred_element_type=jnp.float32)
        + b_fc_ref[...])


def prepare_params(params):
    """One-time (init-path) weight prep: transposes, bias folding, reshapes.

    Keeping this out of the jitted forward removes ~half a dozen tiny HLOs per
    call in this dispatch-latency-bound regime.
    """
    H = params["w_hh0"].shape[0]
    O = params["w_fc"].shape[0]
    f32 = jnp.float32
    return {
        "w_ih0t": jnp.asarray(params["w_ih0"].T, f32),                      # (I, H)
        "w_hh0t": jnp.asarray(params["w_hh0"].T, f32),                      # (H, H)
        "w_ih1t": jnp.asarray(params["w_ih1"].T, f32),                      # (H, H)
        "w_hh1t": jnp.asarray(params["w_hh1"].T, f32),                      # (H, H)
        "b0": (params["b_ih0"] + params["b_hh0"]).reshape(1, H).astype(f32),
        "b1": (params["b_ih1"] + params["b_hh1"]).reshape(1, H).astype(f32),
        "w_fct": jnp.asarray(params["w_fc"].T, f32),                        # (H, O)
        "b_fc": params["b_fc"].reshape(1, O).astype(f32),
    }


@jax.jit
def lotto_rnn_forward(x, h, prepped):
    """x: (B, T, I) batch_first like PyTorch. h: (2, B, H). Returns (B, O)."""
    B, T, I = x.shape
    O = prepped["w_fct"].shape[1]

    args = (
        x.astype(jnp.float32),
        h.astype(jnp.float32),
        prepped["w_ih0t"],
        prepped["w_hh0t"],
        prepped["w_ih1t"],
        prepped["w_hh1t"],
        prepped["b0"],
        prepped["b1"],
        prepped["w_fct"],
        prepped["b_fc"],
    )

    vmem = pl.BlockSpec(memory_space=pltpu.MemorySpace.VMEM)
    # Grid-less single program: all operands total a few KB of VMEM, and the
    # pallas_call is the only device op in this jit.
    return pl.pallas_call(
        _rnn_kernel,
        out_shape=jax.ShapeDtypeStruct((B, O), jnp.float32),
        in_specs=[vmem] * len(args),
        out_specs=vmem,
    )(*args)


def _reference_forward(x, h, params):
    """Pure-JAX reference mirroring torch.nn.RNN(batch_first=True) + Linear."""
    B, T, I = x.shape
    h0, h1 = h[0], h[1]
    for t in range(T):
        x_t = x[:, t, :]
        h0 = jnp.tanh(x_t @ params["w_ih0"].T + params["b_ih0"]
                      + h0 @ params["w_hh0"].T + params["b_hh0"])
        h1 = jnp.tanh(h0 @ params["w_ih1"].T + params["b_ih1"]
                      + h1 @ params["w_hh1"].T + params["b_hh1"])
    return h1 @ params["w_fc"].T + params["b_fc"]


def init_params(key, input_size, hidden_size, output_size):
    """Deterministic init matching nn.RNN / nn.Linear shapes (uniform +-1/sqrt(H))."""
    bound = 1.0 / jnp.sqrt(jnp.float32(hidden_size))
    ks = jax.random.split(key, 12)
    u = lambda k, shape: jax.random.uniform(k, shape, jnp.float32, -bound, bound)
    return {
        "w_ih0": u(ks[0], (hidden_size, input_size)),
        "w_hh0": u(ks[1], (hidden_size, hidden_size)),
        "b_ih0": u(ks[2], (hidden_size,)),
        "b_hh0": u(ks[3], (hidden_size,)),
        "w_ih1": u(ks[4], (hidden_size, hidden_size)),
        "w_hh1": u(ks[5], (hidden_size, hidden_size)),
        "b_ih1": u(ks[6], (hidden_size,)),
        "b_hh1": u(ks[7], (hidden_size,)),
        "w_fc":  u(ks[8], (output_size, hidden_size)),
        "b_fc":  u(ks[9], (output_size,)),
    }


if __name__ == "__main__":
    # Shapes from the module defaults: batch=2, seq=8, input=6, hidden=64,
    # num_layers=2, output=6.
    B, T, I, H, O = 2, 8, 6, 64, 6

    key = jax.random.PRNGKey(0)
    k_x, k_h, k_p = jax.random.split(key, 3)
    x = jax.random.normal(k_x, (B, T, I), jnp.float32)
    h = jax.random.normal(k_h, (2, B, H), jnp.float32)
    params = init_params(k_p, I, H, O)
    prepped = prepare_params(params)   # one-time weight prep (outside jit path)

    out = lotto_rnn_forward(x, h, prepped)
    out = jax.block_until_ready(out)

    ref = _reference_forward(x, h, params)
    assert out.shape == (B, O)
    assert jnp.allclose(out, ref, atol=2e-3, rtol=2e-3), "mismatch vs reference"

    print("KERNEL_OK")
</pallas_src>

<mosaic_0001>
module attributes {stable_mosaic.version = 11 : i64} {
  func.func @_rnn_kernel(%arg0: memref<2x8x6xf32, #tpu.memory_space<vmem>>, %arg1: memref<2x2x64xf32, #tpu.memory_space<vmem>>, %arg2: memref<6x64xf32, #tpu.memory_space<vmem>>, %arg3: memref<64x64xf32, #tpu.memory_space<vmem>>, %arg4: memref<64x64xf32, #tpu.memory_space<vmem>>, %arg5: memref<64x64xf32, #tpu.memory_space<vmem>>, %arg6: memref<1x64xf32, #tpu.memory_space<vmem>>, %arg7: memref<1x64xf32, #tpu.memory_space<vmem>>, %arg8: memref<64x6xf32, #tpu.memory_space<vmem>>, %arg9: memref<1x6xf32, #tpu.memory_space<vmem>>, %arg10: memref<2x6xf32, #tpu.memory_space<vmem>>) attributes {dimension_semantics = [], scalar_prefetch = 0 : i64, scratch_operands = 0 : i64, tpu.core_type = #tpu.core_type<tc>} {
    %c0 = arith.constant 0 : index
    %c0_0 = arith.constant 0 : index
    %0 = vector.load %arg2[%c0, %c0_0] : memref<6x64xf32, #tpu.memory_space<vmem>>, vector<6x64xf32>
    %c0_1 = arith.constant 0 : index
    %c0_2 = arith.constant 0 : index
    %1 = vector.load %arg3[%c0_1, %c0_2] : memref<64x64xf32, #tpu.memory_space<vmem>>, vector<64x64xf32>
    %c0_3 = arith.constant 0 : index
    %c0_4 = arith.constant 0 : index
    %2 = vector.load %arg4[%c0_3, %c0_4] : memref<64x64xf32, #tpu.memory_space<vmem>>, vector<64x64xf32>
    %c0_5 = arith.constant 0 : index
    %c0_6 = arith.constant 0 : index
    %3 = vector.load %arg5[%c0_5, %c0_6] : memref<64x64xf32, #tpu.memory_space<vmem>>, vector<64x64xf32>
    %c0_7 = arith.constant 0 : index
    %c0_8 = arith.constant 0 : index
    %4 = vector.load %arg6[%c0_7, %c0_8] : memref<1x64xf32, #tpu.memory_space<vmem>>, vector<1x64xf32>
    %5 = vector.shape_cast %4 : vector<1x64xf32> to vector<1x64xf32>
    %6 = vector.broadcast %5 : vector<1x64xf32> to vector<2x64xf32>
    %c0_9 = arith.constant 0 : index
    %c0_10 = arith.constant 0 : index
    %7 = vector.load %arg7[%c0_9, %c0_10] : memref<1x64xf32, #tpu.memory_space<vmem>>, vector<1x64xf32>
    %8 = vector.shape_cast %7 : vector<1x64xf32> to vector<1x64xf32>
    %9 = vector.broadcast %8 : vector<1x64xf32> to vector<2x64xf32>
    %c0_11 = arith.constant 0 : index
    %c0_12 = arith.constant 0 : index
    %c0_13 = arith.constant 0 : index
    %10 = vector.load %arg0[%c0_11, %c0_12, %c0_13] : memref<2x8x6xf32, #tpu.memory_space<vmem>>, vector<2x8x6xf32>
    %11 = vector.extract_strided_slice %10 {offsets = [0, 0, 0], sizes = [2, 1, 6], strides = [1, 1, 1]} : vector<2x8x6xf32> to vector<2x1x6xf32>
    %12 = vector.shape_cast %11 : vector<2x1x6xf32> to vector<2x6xf32>
    %cst = arith.constant dense<0.000000e+00> : vector<2x64xf32>
    %13 = tpu.matmul %12, %0, %cst {dimension_numbers = #tpu.dot_dimension_numbers<[1], [0], [0], [1], [0, 0, 1, 1], [], []>} : vector<2x6xf32>, vector<6x64xf32>, vector<2x64xf32> -> vector<2x64xf32>
    %14 = arith.addf %13, %6 : vector<2x64xf32>
    %15 = vector.extract_strided_slice %10 {offsets = [0, 1, 0], sizes = [2, 1, 6], strides = [1, 1, 1]} : vector<2x8x6xf32> to vector<2x1x6xf32>
    %16 = vector.shape_cast %15 : vector<2x1x6xf32> to vector<2x6xf32>
    %cst_14 = arith.constant dense<0.000000e+00> : vector<2x64xf32>
    %17 = tpu.matmul %16, %0, %cst_14 {dimension_numbers = #tpu.dot_dimension_numbers<[1], [0], [0], [1], [0, 0, 1, 1], [], []>} : vector<2x6xf32>, vector<6x64xf32>, vector<2x64xf32> -> vector<2x64xf32>
    %18 = arith.addf %17, %6 : vector<2x64xf32>
    %19 = vector.extract_strided_slice %10 {offsets = [0, 2, 0], sizes = [2, 1, 6], strides = [1, 1, 1]} : vector<2x8x6xf32> to vector<2x1x6xf32>
    %20 = vector.shape_cast %19 : vector<2x1x6xf32> to vector<2x6xf32>
    %cst_15 = arith.constant dense<0.000000e+00> : vector<2x64xf32>
    %21 = tpu.matmul %20, %0, %cst_15 {dimension_numbers = #tpu.dot_dimension_numbers<[1], [0], [0], [1], [0, 0, 1, 1], [], []>} : vector<2x6xf32>, vector<6x64xf32>, vector<2x64xf32> -> vector<2x64xf32>
    %22 = arith.addf %21, %6 : vector<2x64xf32>
    %23 = vector.extract_strided_slice %10 {offsets = [0, 3, 0], sizes = [2, 1, 6], strides = [1, 1, 1]} : vector<2x8x6xf32> to vector<2x1x6xf32>
    %24 = vector.shape_cast %23 : vector<2x1x6xf32> to vector<2x6xf32>
    %cst_16 = arith.constant dense<0.000000e+00> : vector<2x64xf32>
    %25 = tpu.matmul %24, %0, %cst_16 {dimension_numbers = #tpu.dot_dimension_numbers<[1], [0], [0], [1], [0, 0, 1, 1], [], []>} : vector<2x6xf32>, vector<6x64xf32>, vector<2x64xf32> -> vector<2x64xf32>
    %26 = arith.addf %25, %6 : vector<2x64xf32>
    %27 = vector.extract_strided_slice %10 {offsets = [0, 4, 0], sizes = [2, 1, 6], strides = [1, 1, 1]} : vector<2x8x6xf32> to vector<2x1x6xf32>
    %28 = vector.shape_cast %27 : vector<2x1x6xf32> to vector<2x6xf32>
    %cst_17 = arith.constant dense<0.000000e+00> : vector<2x64xf32>
    %29 = tpu.matmul %28, %0, %cst_17 {dimension_numbers = #tpu.dot_dimension_numbers<[1], [0], [0], [1], [0, 0, 1, 1], [], []>} : vector<2x6xf32>, vector<6x64xf32>, vector<2x64xf32> -> vector<2x64xf32>
    %30 = arith.addf %29, %6 : vector<2x64xf32>
    %31 = vector.extract_strided_slice %10 {offsets = [0, 5, 0], sizes = [2, 1, 6], strides = [1, 1, 1]} : vector<2x8x6xf32> to vector<2x1x6xf32>
    %32 = vector.shape_cast %31 : vector<2x1x6xf32> to vector<2x6xf32>
    %cst_18 = arith.constant dense<0.000000e+00> : vector<2x64xf32>
    %33 = tpu.matmul %32, %0, %cst_18 {dimension_numbers = #tpu.dot_dimension_numbers<[1], [0], [0], [1], [0, 0, 1, 1], [], []>} : vector<2x6xf32>, vector<6x64xf32>, vector<2x64xf32> -> vector<2x64xf32>
    %34 = arith.addf %33, %6 : vector<2x64xf32>
    %35 = vector.extract_strided_slice %10 {offsets = [0, 6, 0], sizes = [2, 1, 6], strides = [1, 1, 1]} : vector<2x8x6xf32> to vector<2x1x6xf32>
    %36 = vector.shape_cast %35 : vector<2x1x6xf32> to vector<2x6xf32>
    %cst_19 = arith.constant dense<0.000000e+00> : vector<2x64xf32>
    %37 = tpu.matmul %36, %0, %cst_19 {dimension_numbers = #tpu.dot_dimension_numbers<[1], [0], [0], [1], [0, 0, 1, 1], [], []>} : vector<2x6xf32>, vector<6x64xf32>, vector<2x64xf32> -> vector<2x64xf32>
    %38 = arith.addf %37, %6 : vector<2x64xf32>
    %39 = vector.extract_strided_slice %10 {offsets = [0, 7, 0], sizes = [2, 1, 6], strides = [1, 1, 1]} : vector<2x8x6xf32> to vector<2x1x6xf32>
    %40 = vector.shape_cast %39 : vector<2x1x6xf32> to vector<2x6xf32>
    %cst_20 = arith.constant dense<0.000000e+00> : vector<2x64xf32>
    %41 = tpu.matmul %40, %0, %cst_20 {dimension_numbers = #tpu.dot_dimension_numbers<[1], [0], [0], [1], [0, 0, 1, 1], [], []>} : vector<2x6xf32>, vector<6x64xf32>, vector<2x64xf32> -> vector<2x64xf32>
    %42 = arith.addf %41, %6 : vector<2x64xf32>
    %c0_21 = arith.constant 0 : index
    %c0_22 = arith.constant 0 : index
    %c0_23 = arith.constant 0 : index
    %43 = vector.load %arg1[%c0_21, %c0_22, %c0_23] : memref<2x2x64xf32, #tpu.memory_space<vmem>>, vector<1x2x64xf32>
    %44 = vector.shape_cast %43 : vector<1x2x64xf32> to vector<2x64xf32>
    %c1 = arith.constant 1 : index
    %c0_24 = arith.constant 0 : index
    %c0_25 = arith.constant 0 : index
    %45 = vector.load %arg1[%c1, %c0_24, %c0_25] : memref<2x2x64xf32, #tpu.memory_space<vmem>>, vector<1x2x64xf32>
    %46 = vector.shape_cast %45 : vector<1x2x64xf32> to vector<2x64xf32>
    %cst_26 = arith.constant dense<0.000000e+00> : vector<2x64xf32>
    %47 = tpu.matmul %44, %1, %cst_26 {dimension_numbers = #tpu.dot_dimension_numbers<[1], [0], [0], [1], [0, 0, 1, 1], [], []>} : vector<2x64xf32>, vector<64x64xf32>, vector<2x64xf32> -> vector<2x64xf32>
    %48 = arith.addf %14, %47 : vector<2x64xf32>
    %49 = math.tanh %48 : vector<2x64xf32>
    %cst_27 = arith.constant dense<0.000000e+00> : vector<2x64xf32>
    %50 = tpu.matmul %49, %1, %cst_27 {dimension_numbers = #tpu.dot_dimension_numbers<[1], [0], [0], [1], [0, 0, 1, 1], [], []>} : vector<2x64xf32>, vector<64x64xf32>, vector<2x64xf32> -> vector<2x64xf32>
    %51 = arith.addf %18, %50 : vector<2x64xf32>
    %52 = math.tanh %51 : vector<2x64xf32>
    %cst_28 = arith.constant dense<0.000000e+00> : vector<2x64xf32>
    %53 = tpu.matmul %49, %2, %cst_28 {dimension_numbers = #tpu.dot_dimension_numbers<[1], [0], [0], [1], [0, 0, 1, 1], [], []>} : vector<2x64xf32>, vector<64x64xf32>, vector<2x64xf32> -> vector<2x64xf32>
    %cst_29 = arith.constant dense<0.000000e+00> : vector<2x64xf32>
    %54 = tpu.matmul %46, %3, %cst_29 {dimension_numbers = #tpu.dot_dimension_numbers<[1], [0], [0], [1], [0, 0, 1, 1], [], []>} : vector<2x64xf32>, vector<64x64xf32>, vector<2x64xf32> -> vector<2x64xf32>
    %55 = arith.addf %53, %54 : vector<2x64xf32>
    %56 = arith.addf %55, %9 : vector<2x64xf32>
    %57 = math.tanh %56 : vector<2x64xf32>
    %cst_30 = arith.constant dense<0.000000e+00> : vector<2x64xf32>
    %58 = tpu.matmul %52, %1, %cst_30 {dimension_numbers = #tpu.dot_dimension_numbers<[1], [0], [0], [1], [0, 0, 1, 1], [], []>} : vector<2x64xf32>, vector<64x64xf32>, vector<2x64xf32> -> vector<2x64xf32>
    %59 = arith.addf %22, %58 : vector<2x64xf32>
    %60 = math.tanh %59 : vector<2x64xf32>
    %cst_31 = arith.constant dense<0.000000e+00> : vector<2x64xf32>
    %61 = tpu.matmul %52, %2, %cst_31 {dimension_numbers = #tpu.dot_dimension_numbers<[1], [0], [0], [1], [0, 0, 1, 1], [], []>} : vector<2x64xf32>, vector<64x64xf32>, vector<2x64xf32> -> vector<2x64xf32>
    %cst_32 = arith.constant dense<0.000000e+00> : vector<2x64xf32>
    %62 = tpu.matmul %57, %3, %cst_32 {dimension_numbers = #tpu.dot_dimension_numbers<[1], [0], [0], [1], [0, 0, 1, 1], [], []>} : vector<2x64xf32>, vector<64x64xf32>, vector<2x64xf32> -> vector<2x64xf32>
    %63 = arith.addf %61, %62 : vector<2x64xf32>
    %64 = arith.addf %63, %9 : vector<2x64xf32>
    %65 = math.tanh %64 : vector<2x64xf32>
    %cst_33 = arith.constant dense<0.000000e+00> : vector<2x64xf32>
    %66 = tpu.matmul %60, %1, %cst_33 {dimension_numbers = #tpu.dot_dimension_numbers<[1], [0], [0], [1], [0, 0, 1, 1], [], []>} : vector<2x64xf32>, vector<64x64xf32>, vector<2x64xf32> -> vector<2x64xf32>
    %67 = arith.addf %26, %66 : vector<2x64xf32>
    %68 = math.tanh %67 : vector<2x64xf32>
    %cst_34 = arith.constant dense<0.000000e+00> : vector<2x64xf32>
    %69 = tpu.matmul %60, %2, %cst_34 {dimension_numbers = #tpu.dot_dimension_numbers<[1], [0], [0], [1], [0, 0, 1, 1], [], []>} : vector<2x64xf32>, vector<64x64xf32>, vector<2x64xf32> -> vector<2x64xf32>
    %cst_35 = arith.constant dense<0.000000e+00> : vector<2x64xf32>
    %70 = tpu.matmul %65, %3, %cst_35 {dimension_numbers = #tpu.dot_dimension_numbers<[1], [0], [0], [1], [0, 0, 1, 1], [], []>} : vector<2x64xf32>, vector<64x64xf32>, vector<2x64xf32> -> vector<2x64xf32>
    %71 = arith.addf %69, %70 : vector<2x64xf32>
    %72 = arith.addf %71, %9 : vector<2x64xf32>
    %73 = math.tanh %72 : vector<2x64xf32>
    %cst_36 = arith.constant dense<0.000000e+00> : vector<2x64xf32>
    %74 = tpu.matmul %68, %1, %cst_36 {dimension_numbers = #tpu.dot_dimension_numbers<[1], [0], [0], [1], [0, 0, 1, 1], [], []>} : vector<2x64xf32>, vector<64x64xf32>, vector<2x64xf32> -> vector<2x64xf32>
    %75 = arith.addf %30, %74 : vector<2x64xf32>
    %76 = math.tanh %75 : vector<2x64xf32>
    %cst_37 = arith.constant dense<0.000000e+00> : vector<2x64xf32>
    %77 = tpu.matmul %68, %2, %cst_37 {dimension_numbers = #tpu.dot_dimension_numbers<[1], [0], [0], [1], [0, 0, 1, 1], [], []>} : vector<2x64xf32>, vector<64x64xf32>, vector<2x64xf32> -> vector<2x64xf32>
    %cst_38 = arith.constant dense<0.000000e+00> : vector<2x64xf32>
    %78 = tpu.matmul %73, %3, %cst_38 {dimension_numbers = #tpu.dot_dimension_numbers<[1], [0], [0], [1], [0, 0, 1, 1], [], []>} : vector<2x64xf32>, vector<64x64xf32>, vector<2x64xf32> -> vector<2x64xf32>
    %79 = arith.addf %77, %78 : vector<2x64xf32>
    %80 = arith.addf %79, %9 : vector<2x64xf32>
    %81 = math.tanh %80 : vector<2x64xf32>
    %cst_39 = arith.constant dense<0.000000e+00> : vector<2x64xf32>
    %82 = tpu.matmul %76, %1, %cst_39 {dimension_numbers = #tpu.dot_dimension_numbers<[1], [0], [0], [1], [0, 0, 1, 1], [], []>} : vector<2x64xf32>, vector<64x64xf32>, vector<2x64xf32> -> vector<2x64xf32>
    %83 = arith.addf %34, %82 : vector<2x64xf32>
    %84 = math.tanh %83 : vector<2x64xf32>
    %cst_40 = arith.constant dense<0.000000e+00> : vector<2x64xf32>
    %85 = tpu.matmul %76, %2, %cst_40 {dimension_numbers = #tpu.dot_dimension_numbers<[1], [0], [0], [1], [0, 0, 1, 1], [], []>} : vector<2x64xf32>, vector<64x64xf32>, vector<2x64xf32> -> vector<2x64xf32>
    %cst_41 = arith.constant dense<0.000000e+00> : vector<2x64xf32>
    %86 = tpu.matmul %81, %3, %cst_41 {dimension_numbers = #tpu.dot_dimension_numbers<[1], [0], [0], [1], [0, 0, 1, 1], [], []>} : vector<2x64xf32>, vector<64x64xf32>, vector<2x64xf32> -> vector<2x64xf32>
    %87 = arith.addf %85, %86 : vector<2x64xf32>
    %88 = arith.addf %87, %9 : vector<2x64xf32>
    %89 = math.tanh %88 : vector<2x64xf32>
    %cst_42 = arith.constant dense<0.000000e+00> : vector<2x64xf32>
    %90 = tpu.matmul %84, %1, %cst_42 {dimension_numbers = #tpu.dot_dimension_numbers<[1], [0], [0], [1], [0, 0, 1, 1], [], []>} : vector<2x64xf32>, vector<64x64xf32>, vector<2x64xf32> -> vector<2x64xf32>
    %91 = arith.addf %38, %90 : vector<2x64xf32>
    %92 = math.tanh %91 : vector<2x64xf32>
    %cst_43 = arith.constant dense<0.000000e+00> : vector<2x64xf32>
    %93 = tpu.matmul %84, %2, %cst_43 {dimension_numbers = #tpu.dot_dimension_numbers<[1], [0], [0], [1], [0, 0, 1, 1], [], []>} : vector<2x64xf32>, vector<64x64xf32>, vector<2x64xf32> -> vector<2x64xf32>
    %cst_44 = arith.constant dense<0.000000e+00> : vector<2x64xf32>
    %94 = tpu.matmul %89, %3, %cst_44 {dimension_numbers = #tpu.dot_dimension_numbers<[1], [0], [0], [1], [0, 0, 1, 1], [], []>} : vector<2x64xf32>, vector<64x64xf32>, vector<2x64xf32> -> vector<2x64xf32>
    %95 = arith.addf %93, %94 : vector<2x64xf32>
    %96 = arith.addf %95, %9 : vector<2x64xf32>
    %97 = math.tanh %96 : vector<2x64xf32>
    %cst_45 = arith.constant dense<0.000000e+00> : vector<2x64xf32>
    %98 = tpu.matmul %92, %1, %cst_45 {dimension_numbers = #tpu.dot_dimension_numbers<[1], [0], [0], [1], [0, 0, 1, 1], [], []>} : vector<2x64xf32>, vector<64x64xf32>, vector<2x64xf32> -> vector<2x64xf32>
    %99 = arith.addf %42, %98 : vector<2x64xf32>
    %100 = math.tanh %99 : vector<2x64xf32>
    %cst_46 = arith.constant dense<0.000000e+00> : vector<2x64xf32>
    %101 = tpu.matmul %92, %2, %cst_46 {dimension_numbers = #tpu.dot_dimension_numbers<[1], [0], [0], [1], [0, 0, 1, 1], [], []>} : vector<2x64xf32>, vector<64x64xf32>, vector<2x64xf32> -> vector<2x64xf32>
    %cst_47 = arith.constant dense<0.000000e+00> : vector<2x64xf32>
    %102 = tpu.matmul %97, %3, %cst_47 {dimension_numbers = #tpu.dot_dimension_numbers<[1], [0], [0], [1], [0, 0, 1, 1], [], []>} : vector<2x64xf32>, vector<64x64xf32>, vector<2x64xf32> -> vector<2x64xf32>
    %103 = arith.addf %101, %102 : vector<2x64xf32>
    %104 = arith.addf %103, %9 : vector<2x64xf32>
    %105 = math.tanh %104 : vector<2x64xf32>
    %cst_48 = arith.constant dense<0.000000e+00> : vector<2x64xf32>
    %106 = tpu.matmul %100, %2, %cst_48 {dimension_numbers = #tpu.dot_dimension_numbers<[1], [0], [0], [1], [0, 0, 1, 1], [], []>} : vector<2x64xf32>, vector<64x64xf32>, vector<2x64xf32> -> vector<2x64xf32>
    %cst_49 = arith.constant dense<0.000000e+00> : vector<2x64xf32>
    %107 = tpu.matmul %105, %3, %cst_49 {dimension_numbers = #tpu.dot_dimension_numbers<[1], [0], [0], [1], [0, 0, 1, 1], [], []>} : vector<2x64xf32>, vector<64x64xf32>, vector<2x64xf32> -> vector<2x64xf32>
    %108 = arith.addf %106, %107 : vector<2x64xf32>
    %109 = arith.addf %108, %9 : vector<2x64xf32>
    %110 = math.tanh %109 : vector<2x64xf32>
    %c0_50 = arith.constant 0 : index
    %c0_51 = arith.constant 0 : index
    %111 = vector.load %arg8[%c0_50, %c0_51] : memref<64x6xf32, #tpu.memory_space<vmem>>, vector<64x6xf32>
    %cst_52 = arith.constant dense<0.000000e+00> : vector<2x6xf32>
    %112 = tpu.matmul %110, %111, %cst_52 {dimension_numbers = #tpu.dot_dimension_numbers<[1], [0], [0], [1], [0, 0, 1, 1], [], []>} : vector<2x64xf32>, vector<64x6xf32>, vector<2x6xf32> -> vector<2x6xf32>
    %c0_53 = arith.constant 0 : index
    %c0_54 = arith.constant 0 : index
    %113 = vector.load %arg9[%c0_53, %c0_54] : memref<1x6xf32, #tpu.memory_space<vmem>>, vector<1x6xf32>
    %114 = vector.broadcast %113 : vector<1x6xf32> to vector<2x6xf32>
    %115 = arith.addf %112, %114 : vector<2x6xf32>
    %c0_55 = arith.constant 0 : index
    %c0_56 = arith.constant 0 : index
    %116 = vector.load %arg10[%c0_55, %c0_56] : memref<2x6xf32, #tpu.memory_space<vmem>>, vector<2x6xf32>
    tpu.vector_store %arg10[%c0_55, %c0_56], %115 {strides = array<i32>} : memref<2x6xf32, #tpu.memory_space<vmem>>, vector<2x6xf32>,
    return
  }
}

</mosaic_0001>

<bundles_post_ra>
// kernel: lotto_rnn_forward.1
= control target key start
LH: loop header
LB: loop body
LE: loop exit
PB: predicated region body
PF: predicated region fallthrough
CT: control target
= control target key end

     0   :  { %15 = vsyncpa [#allocation3], 0  ;;  %s4506_s0 = inlined_call_operand.vmem [shape: f32[2,8,6], index: 0, kind: input, shape index: {}]   ;;  %s4507_s1 = inlined_call_operand.hbm [shape: f32[2,2,64], index: 1, kind: input, shape index: {}]   ;;  %s4508_s2 = inlined_call_operand.hbm [shape: f32[6,64], index: 2, kind: input, shape index: {}]   ;;  %s4509_s3 = inlined_call_operand.vmem [shape: f32[64,64], index: 3, kind: input, shape index: {}]   ;;  %s4510_s4 = inlined_call_operand.vmem [shape: f32[64,64], index: 4, kind: input, shape index: {}]   ;;  %s4511_s5 = inlined_call_operand.hbm [shape: f32[64,64], index: 5, kind: input, shape index: {}]   ;;  %s4512_s6 = inlined_call_operand.vmem [shape: f32[1,64], index: 6, kind: input, shape index: {}]   ;;  %s4513_s7 = inlined_call_operand.vmem [shape: f32[1,64], index: 7, kind: input, shape index: {}]   ;;  %s4514_s8 = inlined_call_operand.vmem [shape: f32[64,6], index: 8, kind: input, shape index: {}]   ;;  %s4515_s9 = inlined_call_operand.hbm [shape: f32[1,6], index: 9, kind: input, shape index: {}]   ;;  %s4516_s10 = inlined_call_operand.hbm [shape: f32[2,6], index: 10, kind: output, shape index: {}]  }
   0x1   :  { %16 = vsyncpa [#allocation6], 0 }
   0x2   :  { %17 = vsyncpa [#allocation9], 0 }
   0x3   :  { %18 = vsyncpa [#allocation4], 0  ;;  %s3892_s13 = smov [#allocation5]   ;;  %s3893_s15 = smov [#allocation2]  }
   0x4   :  { %s39_s14 = sshll.u32 %s3892_s13, 4  ;;  %s26_s16 = sshll.u32 %s3893_s15, 4  ;;  %s40_s14 = int_to_ptr.vmem [resolvable:$true] %s39_s14  ;;  %s3959_s16 = int_to_ptr.vmem [resolvable:$true] %s26_s16 }
   0x5   :  { %s3774_s19 = scalar_lea.hbm %s4508_s2, 128 }
   0x6   :  { %p3775_p0 = scmp.ne.s32.totalorder %s4508_s2, %s3774_s19  ;;  %p3778_p1 = scmp.lt.u32.totalorder %s3774_s19, %s4508_s2 }
   0x8   :  { %p3780_p2 = pnand %p3778_p1, %p3775_p0 }
   0xa   :  { %3783 = shalt.err (!%p3780_p2)
}
   0xb   :  { %s3784_s24 = scalar_lea.vmem %s40_s14, 128  ;;  %p3789_p4 = scmp.lt.s32.totalorder %s40_s14, %s40_s14 }
   0xc   :  { %p3785_p3 = scmp.ne.s32.totalorder %s40_s14, %s3784_s24  ;;  %p3790_p5 = scmp.lt.s32.totalorder %s3784_s24, %s3784_s24 }
   0xe   :  { %p3791_p6 = por %p3790_p5, %p3789_p4 }
  0x10   :  { %p3792_p7 = pnand %p3791_p6, %p3785_p3 }
  0x12   :  { %3795 = shalt.err (!%p3792_p7)
}
  0x13   :  { %42 = dma.hbm_to_vmem [thread:$0]  %s4508_s2, 128, %s40_s14, [#allocation6]  }
  0x14   :  { %s3796_s29 = scalar_lea.hbm %s4507_s1, 64 }
  0x15   :  { %p3797_p8 = scmp.ne.s32.totalorder %s4507_s1, %s3796_s29  ;;  %p3800_p9 = scmp.lt.u32.totalorder %s3796_s29, %s4507_s1 }
  0x17   :  { %p3802_p10 = pnand %p3800_p9, %p3797_p8 }
  0x19   :  { %3805 = shalt.err (!%p3802_p10)
}
  0x1a   :  { %s3806_s15 = scalar_lea.vmem %s3959_s16, 64  ;;  %p3811_p12 = scmp.lt.s32.totalorder %s3959_s16, %s3959_s16 }
  0x1b   :  { %p3807_p11 = scmp.ne.s32.totalorder %s3959_s16, %s3806_s15  ;;  %p3812_p13 = scmp.lt.s32.totalorder %s3806_s15, %s3806_s15 }
  0x1d   :  { %p3813_p0 = por %p3812_p13, %p3811_p12 }
  0x1f   :  { %p3814_p1 = pnand %p3813_p0, %p3807_p11 }
  0x21   :  { %3817 = shalt.err (!%p3814_p1)
}
  0x22   :  { %s3894_s2 = smov 32   ;;  %s3895_s14 = smov 2  }
  0x23   :  { %32 = dma.hbm_to_vmem [thread:$0]  %s4507_s1, 64, %s3959_s16, [#allocation3], %s3894_s2, %s3894_s2, %s3895_s14  }
  0x24   :  { %s3896_s19 = smov [#allocation7]   ;;  %s3818_s23 = scalar_lea.hbm %s4511_s5, 1024 }
  0x25   :  { %s52_s20 = sshll.u32 %s3896_s19, 4  ;;  %p3819_p2 = scmp.ne.s32.totalorder %s4511_s5, %s3818_s23  ;;  %s53_s20 = int_to_ptr.vmem [resolvable:$true] %s52_s20 }
  0x26   :  { %p3822_p3 = scmp.lt.u32.totalorder %s3818_s23, %s4511_s5 }
  0x28   :  { %p3824_p4 = pnand %p3822_p3, %p3819_p2 }
  0x2a   :  { %3827 = shalt.err (!%p3824_p4)
}
  0x2b   :  { %s3828_s28 = scalar_lea.vmem %s53_s20, 1024  ;;  %p3833_p6 = scmp.lt.s32.totalorder %s53_s20, %s53_s20 }
  0x2c   :  { %p3829_p5 = scmp.ne.s32.totalorder %s53_s20, %s3828_s28  ;;  %p3834_p7 = scmp.lt.s32.totalorder %s3828_s28, %s3828_s28 }
  0x2e   :  { %p3835_p8 = por %p3834_p7, %p3833_p6 }
  0x30   :  { %p3836_p9 = pnand %p3835_p8, %p3829_p5 }
  0x32   :  { %3839 = shalt.err (!%p3836_p9)
}
  0x33   :  { %s3897_s1 = smov 128   ;;  %s3898_s16 = smov 8  }
  0x34   :  { %58 = dma.hbm_to_vmem [thread:$0]  %s4511_s5, 1024, %s53_s20, [#allocation6], %s3897_s1, %s3897_s1, %s3898_s16  }
  0x35   :  { %s3899_s11 = smov [#allocation8]   ;;  %s3840_s2 = scalar_lea.hbm %s4515_s9, 16 }
  0x36   :  { %s71_s12 = sshll.u32 %s3899_s11, 4  ;;  %p3841_p10 = scmp.ne.s32.totalorder %s4515_s9, %s3840_s2  ;;  %s72_s12 = int_to_ptr.vmem [resolvable:$true] %s71_s12 }
  0x37   :  { %p3844_p11 = scmp.lt.u32.totalorder %s3840_s2, %s4515_s9 }
  0x39   :  { %p3846_p12 = pnand %p3844_p11, %p3841_p10 }
  0x3b   :  { %3849 = shalt.err (!%p3846_p12)
}
  0x3c   :  { %s3850_s21 = scalar_lea.vmem %s72_s12, 16  ;;  %s3854_s5 = scalar_lea.vmem %s72_s12, 32 }
  0x3d   :  { %p3851_p13 = scmp.ne.s32.totalorder %s72_s12, %s3850_s21  ;;  %p3855_p0 = scmp.lt.s32.totalorder %s72_s12, %s72_s12 }
  0x3e   :  { %p3856_p1 = scmp.lt.s32.totalorder %s3854_s5, %s3850_s21 }
  0x40   :  { %p3857_p2 = por %p3856_p1, %p3855_p0 }
  0x42   :  { %p3858_p3 = pnand %p3857_p2, %p3851_p13 }
  0x44   :  { %3861 = shalt.err (!%p3858_p3)
}
  0x45   :  { %74 = dma.hbm_to_vmem [thread:$0]  %s4515_s9, 16, %s72_s12, [#allocation9]  }
  0x46   :  { %3884 = dma.done.wait [#allocation3], 64  }
  0x47   :  { %3885 = vsyncadd [#allocation3], 4294967232 }
  0x48   :  { %3886 = dma.done.wait [#allocation6], 1152  }
  0x49   :  { %3887 = vsyncadd [#allocation6], 4294966144 }
  0x4a   :  { %3888 = dma.done.wait [#allocation9], 16  }
  0x4b   :  { %3889 = vsyncadd [#allocation9], 4294967280  ;;  %v3900_v0 = vmov 0.0   ;;  %vm3901_vm0 = vmmov 0   ;;  %vm136_vm1 = vcmask 1045504   ;;  %v4025_v2 = vld [vmem:[%s4506_s0] sm:$0xff] }
  0x4c   :  { %2913 = vmatprep.subr.mxu0 %v3900_v0  ;;  %2915 = vmatprep.mubr.msk.f32.mxu0 %vm3901_vm0, %v3900_v0  ;;  %v4020_v1 = vld [vmem:[#allocation5] sm:$0x3f]  ;;  %vm131_vm2 = vcmask 1041409   ;;  %vm133_vm3 = vcmask 48128   ;;  %v434_v4 = vrot.slane %v4025_v2, 4  ;;  %v584_v6 = vrot.slane %v4025_v2, 6 }
  0x4d   :  { %2893 = vmatprep.subr.mxu1 %v3900_v0  ;;  %2895 = vmatprep.mubr.msk.f32.mxu1 %vm3901_vm0, %v3900_v0  ;;  %v4030_v3 = vld [vmem:[%s4506_s0 + $0x8] sm:$0xff]  ;;  %v88_v8 = vld [vmem:[%s4509_s3] sm:$0xff]  ;;  %v210_v12 = vrot.slane %v4025_v2, 1  ;;  %v3902_v16 = vmov 0.0|0.0   ;;  %v90_v17 = vld [vmem:[%s4509_s3 + $0x10] sm:$0xff]  ;;  %v284_v20 = vrot.slane %v4025_v2, 2 }
  0x4e   :  { %2914 = vmatpush3.msk.msra.mxu0 %vm136_vm1, %v4020_v1  ;;  %v435_v5 = vrot.slane %v4030_v3, 3  ;;  %v585_v7 = vrot.slane %v4030_v3, 5  ;;  %2894 = vmatpush3.msk.msra.mxu1 %vm136_vm1, %v4020_v1  ;;  %v89_v9 = vld [vmem:[%s4509_s3 + $0x8] sm:$0xff]  ;;  %v130_v10 = vrot.slane %v4030_v3, 7  ;;  %v91_v18 = vld [vmem:[%s4509_s3 + $0x18] sm:$0xff]  ;;  %v285_v21 = vrot.slane %v4030_v3, 1 }
  0x4f   :  { %2923 = vmatprep.subr.mxu0 %v3900_v0  ;;  %2898 = vmatprep.subr.mxu1 %v3900_v0  ;;  %v4059_v15 = vpack.c.bf16 %v89_v9, %v88_v8  ;;  %v211_v19 = vsel %vm131_vm2, %v4030_v3, %v210_v12  ;;  %v4080_v22 = vpack.c.bf16 %v91_v18, %v90_v17  ;;  %v92_v23 = vld [vmem:[%s4509_s3 + $0x20] sm:$0xff]  ;;  %v93_v24 = vld [vmem:[%s4509_s3 + $0x28] sm:$0xff]  ;;  %v359_v26 = vrot.slane %v4025_v2, 3  ;;  %v94_v29 = vld [vmem:[%s4509_s3 + $0x30] sm:$0xff]  ;;  %s3903_s23 = smov [#allocation10]  }
  0x50   :  { %v436_v11 = vsel %vm131_vm2, %v435_v5, %v434_v4  ;;  %v132_v13 = vsel %vm131_vm2, %v130_v10, %v4025_v2  ;;  %v586_v14 = vsel %vm131_vm2, %v585_v7, %v584_v6  ;;  %v286_v25 = vsel %vm131_vm2, %v285_v21, %v284_v20  ;;  %v95_v30 = vld [vmem:[%s4509_s3 + $0x38] sm:$0xff]  ;;  %v734_v36 = vld [vmem:[#allocation2] sm:$0x3]  ;;  %v104_v40 = vld [vmem:[#allocation7] sm:$0xff] }
  0x51   :  { %2916 = vmatmul.mubr.msk.f32.vlgmr.msra.gmra.mrb[0].mxu0 %vm133_vm3, %v436_v11  ;;  %2896 = vmatmul.mubr.msk.f32.vlgmr.msra.gmra.mrb[0].mxu1 %vm133_vm3, %v132_v13  ;;  %v360_v27 = vrot.slane %v4030_v3, 2  ;;  %v4101_v28 = vpack.c.bf16 %v93_v24, %v92_v23  ;;  %v509_v32 = vrot.slane %v4025_v2, 5  ;;  %v510_v33 = vrot.slane %v4030_v3, 4  ;;  %v105_v41 = vld [vmem:[#allocation7 + $0x8] sm:$0xff]  ;;  %v106_v43 = vld [vmem:[#allocation7 + $0x10] sm:$0xff]  ;;  %v107_v44 = vld [vmem:[#allocation7 + $0x18] sm:$0xff] }
  0x52   :  { %2924 = vmatpush3.msk.msra.mxu0 %vm136_vm1, %v4020_v1  ;;  %2925 = vmatprep.mubr.msk.f32.mxu0 %vm3901_vm0, %v3900_v0  ;;  %v4120_v34 = vpack.c.bf16 %v95_v30, %v94_v29  ;;  %vm737_vm4 = vcmask 523264   ;;  %v659_v37 = vrot.slane %v4025_v2, 7  ;;  %v660_v38 = vrot.slane %v4030_v3, 6  ;;  %v108_v46 = vld [vmem:[#allocation7 + $0x20] sm:$0xff]  ;;  %v109_v47 = vld [vmem:[#allocation7 + $0x28] sm:$0xff]  ;;  %v110_v49 = vld [vmem:[#allocation7 + $0x30] sm:$0xff] }
  0x53   :  { %3408 = vmatprep.subr.bf16.mxu0 %v3902_v16  ;;  %2899 = vmatpush3.msk.msra.mxu1 %vm136_vm1, %v4020_v1  ;;  %v361_v31 = vsel %vm131_vm2, %v360_v27, %v359_v26  ;;  %v511_v35 = vsel %vm131_vm2, %v510_v33, %v509_v32  ;;  %v4155_v42 = vpack.c.bf16 %v105_v41, %v104_v40  ;;  %v111_v50 = vld [vmem:[#allocation7 + $0x38] sm:$0xff]  ;;  %v736_v52 = vld [vmem:[#allocation2 + $0x2] sm:$0x3]  ;;  %v4187_v57 = vld [vmem:[%s4512_s6] ss:$0 sm:$0xff]  ;;  %s2597_s6 = sshll.u32 %s3903_s23, 4  ;;  %s2598_s6 = int_to_ptr.vmem [resolvable:$true] %s2597_s6 }
  0x54   :  { %2900 = vmatprep.mubr.msk.f32.mxu1 %vm3901_vm0, %v3900_v0  ;;  %2903 = vmatprep.subr.mxu1 %v3900_v0  ;;  %v661_v39 = vsel %vm131_vm2, %v660_v38, %v659_v37  ;;  %v4159_v45 = vpack.c.bf16 %v107_v44, %v106_v43  ;;  %v4163_v48 = vpack.c.bf16 %v109_v47, %v108_v46  ;;  %v96_v62 = vld [vmem:[%s4510_s4] sm:$0xff]  ;;  %v97_v63 = vld [vmem:[%s4510_s4 + $0x8] sm:$0xff]  ;;  %v98_v2 = vld [vmem:[%s4510_s4 + $0x10] sm:$0xff]  ;;  %vm2589_vm5 = vcmask 41984   ;;  %p3867_p5 = scmp.lt.s32.totalorder %s2598_s6, %s2598_s6 }
  0x55   :  { %2926 = vmatmul.mubr.msk.f32.vlgmr.msra.gmra.mrb[2].mxu0 %vm133_vm3, %v586_v14  ;;  %2901 = vmatmul.mubr.msk.f32.vlgmr.msra.gmra.mrb[2].mxu1 %vm133_vm3, %v211_v19  ;;  %v4167_v51 = vpack.c.bf16 %v111_v50, %v110_v49  ;;  %v99_v3 = vld [vmem:[%s4510_s4 + $0x18] sm:$0xff]  ;;  %v100_v6 = vld [vmem:[%s4510_s4 + $0x20] sm:$0xff]  ;;  %v101_v7 = vld [vmem:[%s4510_s4 + $0x28] sm:$0xff] }
  0x56   :  { %3410 = vmatpush3.bf16.msra.mxu0 %v4059_v15  ;;  %2949 = vmatprep.mubr.msk.f32.mxu0 %vm3901_vm0, %v3900_v0  ;;  %v4206_v5 = vpack.c.bf16 %v99_v3, %v98_v2  ;;  %v4218_v8 = vpack.c.bf16 %v101_v7, %v100_v6  ;;  %v102_v9 = vld [vmem:[%s4510_s4 + $0x30] sm:$0xff]  ;;  %v103_v10 = vld [vmem:[%s4510_s4 + $0x38] sm:$0xff]  ;;  %v4252_v20 = vld [vmem:[%s4513_s7] ss:$0 sm:$0xff] }
  0x57   :  { %3411 = vmatprep.subr.bf16.mxu0 %v3902_v16  ;;  %2904 = vmatpush3.msk.msra.mxu1 %vm136_vm1, %v4020_v1  ;;  %v4228_v11 = vpack.c.bf16 %v103_v10, %v102_v9 }
  0x58   :  { %2905 = vmatprep.mubr.msk.f32.mxu1 %vm3901_vm0, %v3900_v0  ;;  %2908 = vmatprep.subr.mxu1 %v3900_v0 }
  0x59   :  { %2906 = vmatmul.mubr.msk.f32.vlgmr.msra.gmra.mrb[4].mxu1 %vm133_vm3, %v286_v25 }
  0x5a   :  { %3413 = vmatpush3.bf16.msra.mxu0 %v4080_v22  ;;  %2909 = vmatpush3.msk.msra.mxu1 %vm136_vm1, %v4020_v1 }
  0x5b   :  { %3414 = vmatprep.subr.bf16.mxu0 %v3902_v16  ;;  %2910 = vmatprep.mubr.msk.f32.mxu1 %vm3901_vm0, %v3900_v0 }
  0x5c   :  { %2918 = vmatprep.subr.mxu1 %v3900_v0 }
  0x5d   :  { %2911 = vmatmul.mubr.msk.f32.vlgmr.msra.gmra.mrb[6].mxu1 %vm133_vm3, %v361_v31 }
  0x5e   :  { %3416 = vmatpush3.bf16.msra.mxu0 %v4101_v28  ;;  %2919 = vmatpush3.msk.msra.mxu1 %vm136_vm1, %v4020_v1 }
  0x5f   :  { %3417 = vmatprep.subr.bf16.mxu0 %v3902_v16  ;;  %2920 = vmatprep.mubr.msk.f32.mxu1 %vm3901_vm0, %v3900_v0 }
  0x60   :  { %2928 = vmatprep.subr.mxu1 %v3900_v0 }
  0x61   :  { %2921 = vmatmul.mubr.msk.f32.vlgmr.msra.gmra.mrb[8].mxu1 %vm133_vm3, %v511_v35 }
  0x62   :  { %3419 = vmatpush3.bf16.msra.mxu0 %v4120_v34  ;;  %2929 = vmatpush3.msk.msra.mxu1 %vm136_vm1, %v4020_v1  ;;  %v4196_v1 = vpack.c.bf16 %v97_v63, %v96_v62 }
  0x63   :  { %3432 = vmatprep.subr.bf16.mxu0 %v3902_v16  ;;  %2930 = vmatprep.mubr.msk.f32.mxu1 %vm3901_vm0, %v3900_v0 }
  0x64   :  { %3420 = vmatprep.subr.bf16.mxu1 %v3902_v16 }
  0x65   :  { %2950 = vmatmul.mubr.msk.f32.vlgmr.msra.gmra.mrb[4].mxu0 %vm737_vm4, %v734_v36  ;;  %2931 = vmatmul.mubr.msk.f32.vlgmr.msra.gmra.mrb[10].mxu1 %vm133_vm3, %v661_v39 }
  0x66   :  { %2987 = vmatprep.mubr.msk.f32.mxu0 %vm3901_vm0, %v3900_v0  ;;  %3422 = vmatpush3.bf16.msra.mxu1 %v4059_v15 }
  0x67   :  { %2968 = vmatprep.mubr.msk.f32.mxu1 %vm3901_vm0, %v3900_v0  ;;  %3423 = vmatprep.subr.bf16.mxu1 %v3902_v16 }
  0x68   :  { %3434 = vmatpush3.bf16.msra.mxu0 %v4155_v42 }
  0x69   :  { %3435 = vmatprep.subr.bf16.mxu0 %v3902_v16 }
  0x6a   :  { %3425 = vmatpush3.bf16.msra.mxu1 %v4080_v22 }
  0x6b   :  { %3426 = vmatprep.subr.bf16.mxu1 %v3902_v16 }
  0x6c   :  { %3437 = vmatpush3.bf16.msra.mxu0 %v4159_v45 }
  0x6d   :  { %3438 = vmatprep.subr.bf16.mxu0 %v3902_v16 }
  0x6e   :  { %3428 = vmatpush3.bf16.msra.mxu1 %v4101_v28 }
  0x6f   :  { %3429 = vmatprep.subr.bf16.mxu1 %v3902_v16 }
  0x70   :  { %3440 = vmatpush3.bf16.msra.mxu0 %v4163_v48 }
  0x71   :  { %3441 = vmatprep.subr.bf16.mxu0 %v3902_v16 }
  0x72   :  { %3431 = vmatpush3.bf16.msra.mxu1 %v4120_v34 }
  0x73   :  { %3444 = vmatprep.subr.bf16.mxu1 %v3902_v16 }
  0x74   :  { %3443 = vmatpush3.bf16.msra.mxu0 %v4167_v51 }
  0x75   :  { %3456 = vmatprep.subr.bf16.mxu0 %v3902_v16 }
  0x77   :  { %2988 = vmatmul.mubr.msk.f32.vlgmr.msra.gmra.mrb[6].mxu0 %vm737_vm4, %v736_v52 }
  0x78   :  { %3458 = vmatpush3.bf16.msra.mxu0 %v4059_v15  ;;  %3025 = vmatprep.mubr.msk.f32.mxu0 %vm3901_vm0, %v3900_v0 }
  0x79   :  { %3459 = vmatprep.subr.bf16.mxu0 %v3902_v16 }
  0x7c   :  { %3461 = vmatpush3.bf16.msra.mxu0 %v4080_v22 }
  0x7d   :  { %3462 = vmatprep.subr.bf16.mxu0 %v3902_v16 }
  0x80   :  { %3464 = vmatpush3.bf16.msra.mxu0 %v4101_v28 }
  0x81   :  { %3465 = vmatprep.subr.bf16.mxu0 %v3902_v16 }
  0x84   :  { %3467 = vmatpush3.bf16.msra.mxu0 %v4120_v34 }
  0x85   :  { %3480 = vmatprep.subr.bf16.mxu0 %v3902_v16 }
 0x124   :  { %v206_v53 = vpop.f32.mrb[0].mxu1 }
 0x125   :  { %v2897_v54 = vpop.f32.mrb[1].mxu1  ;;  %v207_v58 = vadd.f32 %v4187_v57, %v206_v53 }
 0x12c   :  { %v4182_v55 = vpop.f32.mrb[4].mxu1 }
 0x12d   :  { %v2907_v56 = vpop.f32.mrb[5].mxu1  ;;  %v356_v27 = vadd.f32 %v4187_v57, %v4182_v55 }
 0x138   :  { %v807_v59 = vpop.f32.mrb[4].mxu0 }
 0x139   :  { %v811_v60 = vadd.f32 %v807_v59, %v207_v58  ;;  %v2951_v61 = vpop.f32.mrb[5].mxu0 }
 0x13b   :  { %3742 = vtanh.f32 %v811_v60 }
 0x145   :  { %v3743_v4 = vpop.eup %3742 }
 0x146   :  { %2969 = vmatmul.mubr.msk.f32.vlgmr.msra.gmra.mrb[2].mxu1 %vm737_vm4, %v3743_v4 }
 0x147   :  { %3446 = vmatpush3.bf16.msra.mxu1 %v4196_v1  ;;  %3006 = vmatprep.mubr.msk.f32.mxu1 %vm3901_vm0, %v3900_v0 }
 0x148   :  { %3447 = vmatprep.subr.bf16.mxu1 %v3902_v16 }
 0x14a   :  { %v957_v12 = vpop.f32.mrb[6].mxu0 }
 0x14b   :  { %3449 = vmatpush3.bf16.msra.mxu1 %v4206_v5  ;;  %v2989_v13 = vpop.f32.mrb[7].mxu0 }
 0x14c   :  { %3450 = vmatprep.subr.bf16.mxu1 %v3902_v16 }
 0x14f   :  { %3452 = vmatpush3.bf16.msra.mxu1 %v4218_v8 }
 0x150   :  { %3453 = vmatprep.subr.bf16.mxu1 %v3902_v16 }
 0x153   :  { %3455 = vmatpush3.bf16.msra.mxu1 %v4228_v11 }
 0x154   :  { %3468 = vmatprep.subr.bf16.mxu1 %v3902_v16 }
 0x156   :  { %3007 = vmatmul.mubr.msk.f32.vlgmr.msra.gmra.mrb[12].mxu1 %vm737_vm4, %v3743_v4 }
 0x157   :  { %3470 = vmatpush3.bf16.msra.mxu1 %v4155_v42  ;;  %3044 = vmatprep.mubr.msk.f32.mxu1 %vm3901_vm0, %v3900_v0 }
 0x158   :  { %3471 = vmatprep.subr.bf16.mxu1 %v3902_v16 }
 0x15b   :  { %3473 = vmatpush3.bf16.msra.mxu1 %v4159_v45 }
 0x15c   :  { %3474 = vmatprep.subr.bf16.mxu1 %v3902_v16 }
 0x15f   :  { %3476 = vmatpush3.bf16.msra.mxu1 %v4163_v48 }
 0x160   :  { %3477 = vmatprep.subr.bf16.mxu1 %v3902_v16 }
 0x163   :  { %3479 = vmatpush3.bf16.msra.mxu1 %v4167_v51 }
 0x164   :  { %3492 = vmatprep.subr.bf16.mxu1 %v3902_v16 }
 0x219   :  { %v882_v14 = vpop.f32.mrb[2].mxu1 }
 0x21a   :  { %v3710_v17 = vadd.f32 %v4187_v57, %v882_v14  ;;  %v2970_v18 = vpop.f32.mrb[3].mxu1 }
 0x21c   :  { %3744 = vtanh.f32 %v3710_v17 }
 0x226   :  { %v3745_v19 = vpop.eup %3744 }
 0x227   :  { %3026 = vmatmul.mubr.msk.f32.vlgmr.msra.gmra.mrb[8].mxu0 %vm737_vm4, %v3745_v19 }
 0x228   :  { %3482 = vmatpush3.bf16.msra.mxu0 %v4196_v1  ;;  %3063 = vmatprep.mubr.msk.f32.mxu0 %vm3901_vm0, %v3900_v0 }
 0x229   :  { %v1027_v21 = vpop.f32.mrb[12].mxu1  ;;  %3483 = vmatprep.subr.bf16.mxu0 %v3902_v16 }
 0x22a   :  { %v1028_v23 = vadd.f32 %v1027_v21, %v957_v12  ;;  %v3008_v24 = vpop.f32.mrb[13].mxu1 }
 0x22c   :  { %v1031_v25 = vadd.f32 %v4252_v20, %v1028_v23  ;;  %3485 = vmatpush3.bf16.msra.mxu0 %v4206_v5 }
 0x22d   :  { %3486 = vmatprep.subr.bf16.mxu0 %v3902_v16 }
 0x22e   :  { %3746 = vtanh.f32 %v1031_v25 }
 0x230   :  { %3488 = vmatpush3.bf16.msra.mxu0 %v4218_v8 }
 0x231   :  { %3489 = vmatprep.subr.bf16.mxu0 %v3902_v16 }
 0x234   :  { %3491 = vmatpush3.bf16.msra.mxu0 %v4228_v11 }
 0x235   :  { %3504 = vmatprep.subr.bf16.mxu0 %v3902_v16 }
 0x237   :  { %3064 = vmatmul.mubr.msk.f32.vlgmr.msra.gmra.mrb[10].mxu0 %vm737_vm4, %v3745_v19 }
 0x238   :  { %v3747_v26 = vpop.eup %3746  ;;  %3506 = vmatpush3.bf16.msra.mxu0 %v4155_v42  ;;  %3101 = vmatprep.mubr.msk.f32.mxu0 %vm3901_vm0, %v3900_v0 }
 0x239   :  { %3045 = vmatmul.mubr.msk.f32.vlgmr.msra.gmra.mrb[14].mxu1 %vm737_vm4, %v3747_v26  ;;  %3507 = vmatprep.subr.bf16.mxu0 %v3902_v16 }
 0x23a   :  { %3494 = vmatpush3.bf16.msra.mxu1 %v4059_v15  ;;  %3082 = vmatprep.mubr.msk.f32.mxu1 %vm3901_vm0, %v3900_v0 }
 0x23b   :  { %3495 = vmatprep.subr.bf16.mxu1 %v3902_v16 }
 0x23c   :  { %3509 = vmatpush3.bf16.msra.mxu0 %v4159_v45 }
 0x23d   :  { %3510 = vmatprep.subr.bf16.mxu0 %v3902_v16 }
 0x23e   :  { %3497 = vmatpush3.bf16.msra.mxu1 %v4080_v22 }
 0x23f   :  { %3498 = vmatprep.subr.bf16.mxu1 %v3902_v16 }
 0x240   :  { %3512 = vmatpush3.bf16.msra.mxu0 %v4163_v48 }
 0x241   :  { %3513 = vmatprep.subr.bf16.mxu0 %v3902_v16 }
 0x242   :  { %3500 = vmatpush3.bf16.msra.mxu1 %v4101_v28 }
 0x243   :  { %3501 = vmatprep.subr.bf16.mxu1 %v3902_v16 }
 0x244   :  { %3515 = vmatpush3.bf16.msra.mxu0 %v4167_v51 }
 0x245   :  { %3528 = vmatprep.subr.bf16.mxu0 %v3902_v16 }
 0x246   :  { %3503 = vmatpush3.bf16.msra.mxu1 %v4120_v34 }
 0x247   :  { %3516 = vmatprep.subr.bf16.mxu1 %v3902_v16 }
 0x2fa   :  { %v1102_v29 = vpop.f32.mrb[8].mxu0 }
 0x2fb   :  { %v1106_v30 = vadd.f32 %v1102_v29, %v356_v27  ;;  %v3027_v31 = vpop.f32.mrb[9].mxu0 }
 0x2fd   :  { %3748 = vtanh.f32 %v1106_v30 }
 0x307   :  { %v3749_v32 = vpop.eup %3748 }
 0x308   :  { %3083 = vmatmul.mubr.msk.f32.vlgmr.msra.gmra.mrb[6].mxu1 %vm737_vm4, %v3749_v32 }
 0x309   :  { %3518 = vmatpush3.bf16.msra.mxu1 %v4196_v1  ;;  %3120 = vmatprep.mubr.msk.f32.mxu1 %vm3901_vm0, %v3900_v0 }
 0x30a   :  { %v1247_v33 = vpop.f32.mrb[10].mxu0  ;;  %3519 = vmatprep.subr.bf16.mxu1 %v3902_v16 }
 0x30b   :  { %v3065_v35 = vpop.f32.mrb[11].mxu0 }
 0x30c   :  { %v1177_v36 = vpop.f32.mrb[14].mxu1 }
 0x30d   :  { %v1248_v37 = vadd.f32 %v1247_v33, %v1177_v36  ;;  %v3046_v38 = vpop.f32.mrb[15].mxu1  ;;  %3521 = vmatpush3.bf16.msra.mxu1 %v4206_v5 }
 0x30e   :  { %3522 = vmatprep.subr.bf16.mxu1 %v3902_v16  ;;  %v2503_v38 = vld [vmem:[%s4514_s8 + $0x10] sm:$0xff] }
 0x30f   :  { %v1251_v39 = vadd.f32 %v4252_v20, %v1248_v37 }
 0x311   :  { %3750 = vtanh.f32 %v1251_v39  ;;  %3524 = vmatpush3.bf16.msra.mxu1 %v4218_v8 }
 0x312   :  { %3525 = vmatprep.subr.bf16.mxu1 %v3902_v16 }
 0x315   :  { %3527 = vmatpush3.bf16.msra.mxu1 %v4228_v11 }
 0x316   :  { %3540 = vmatprep.subr.bf16.mxu1 %v3902_v16 }
 0x318   :  { %3121 = vmatmul.mubr.msk.f32.vlgmr.msra.gmra.mrb[16].mxu1 %vm737_vm4, %v3749_v32 }
 0x319   :  { %3542 = vmatpush3.bf16.msra.mxu1 %v4155_v42  ;;  %3158 = vmatprep.mubr.msk.f32.mxu1 %vm3901_vm0, %v3900_v0 }
 0x31a   :  { %3543 = vmatprep.subr.bf16.mxu1 %v3902_v16 }
 0x31b   :  { %v3751_v40 = vpop.eup %3750 }
 0x31c   :  { %3102 = vmatmul.mubr.msk.f32.vlgmr.msra.gmra.mrb[12].mxu0 %vm737_vm4, %v3751_v40  ;;  %v2505_v40 = vld [vmem:[%s4514_s8 + $0x20] sm:$0xff] }
 0x31d   :  { %3530 = vmatpush3.bf16.msra.mxu0 %v4059_v15  ;;  %3139 = vmatprep.mubr.msk.f32.mxu0 %vm3901_vm0, %v3900_v0 }
 0x31e   :  { %3531 = vmatprep.subr.bf16.mxu0 %v3902_v16  ;;  %3545 = vmatpush3.bf16.msra.mxu1 %v4159_v45 }
 0x31f   :  { %3546 = vmatprep.subr.bf16.mxu1 %v3902_v16 }
 0x321   :  { %3533 = vmatpush3.bf16.msra.mxu0 %v4080_v22 }
 0x322   :  { %3534 = vmatprep.subr.bf16.mxu0 %v3902_v16  ;;  %3548 = vmatpush3.bf16.msra.mxu1 %v4163_v48 }
 0x323   :  { %3549 = vmatprep.subr.bf16.mxu1 %v3902_v16 }
 0x325   :  { %3536 = vmatpush3.bf16.msra.mxu0 %v4101_v28 }
 0x326   :  { %3537 = vmatprep.subr.bf16.mxu0 %v3902_v16  ;;  %3551 = vmatpush3.bf16.msra.mxu1 %v4167_v51 }
 0x327   :  { %3564 = vmatprep.subr.bf16.mxu1 %v3902_v16 }
 0x329   :  { %3539 = vmatpush3.bf16.msra.mxu0 %v4120_v34 }
 0x32a   :  { %3552 = vmatprep.subr.bf16.mxu0 %v3902_v16 }
 0x3db   :  { %v1322_v41 = vpop.f32.mrb[6].mxu1 }
 0x3dc   :  { %v3713_v43 = vadd.f32 %v4187_v57, %v1322_v41  ;;  %v3084_v44 = vpop.f32.mrb[7].mxu1  ;;  %v2506_v41 = vld [vmem:[%s4514_s8 + $0x28] sm:$0xff] }
 0x3dd   :  { %v2507_v44 = vld [vmem:[%s4514_s8 + $0x30] sm:$0xff] }
 0x3de   :  { %3752 = vtanh.f32 %v3713_v43  ;;  %v3703_v43 = vpack.c.bf16 %v2506_v41, %v2505_v40 }
 0x3e8   :  { %v3753_v46 = vpop.eup %3752 }
 0x3e9   :  { %3140 = vmatmul.mubr.msk.f32.vlgmr.msra.gmra.mrb[0].mxu0 %vm737_vm4, %v3753_v46 }
 0x3ea   :  { %3554 = vmatpush3.bf16.msra.mxu0 %v4196_v1  ;;  %3177 = vmatprep.mubr.msk.f32.mxu0 %vm3901_vm0, %v3900_v0 }
 0x3eb   :  { %v1467_v47 = vpop.f32.mrb[16].mxu1  ;;  %3555 = vmatprep.subr.bf16.mxu0 %v3902_v16 }
 0x3ec   :  { %v3122_v49 = vpop.f32.mrb[17].mxu1 }
 0x3ee   :  { %3557 = vmatpush3.bf16.msra.mxu0 %v4206_v5 }
 0x3ef   :  { %v1397_v50 = vpop.f32.mrb[12].mxu0  ;;  %3558 = vmatprep.subr.bf16.mxu0 %v3902_v16 }
 0x3f0   :  { %v1468_v52 = vadd.f32 %v1467_v47, %v1397_v50  ;;  %v3103_v53 = vpop.f32.mrb[13].mxu0 }
 0x3f2   :  { %v1471_v54 = vadd.f32 %v4252_v20, %v1468_v52  ;;  %3560 = vmatpush3.bf16.msra.mxu0 %v4218_v8 }
 0x3f3   :  { %3561 = vmatprep.subr.bf16.mxu0 %v3902_v16 }
 0x3f4   :  { %3754 = vtanh.f32 %v1471_v54 }
 0x3f6   :  { %3563 = vmatpush3.bf16.msra.mxu0 %v4228_v11 }
 0x3f7   :  { %3576 = vmatprep.subr.bf16.mxu0 %v3902_v16 }
 0x3f9   :  { %3178 = vmatmul.mubr.msk.f32.vlgmr.msra.gmra.mrb[14].mxu0 %vm737_vm4, %v3753_v46  ;;  %v2508_v46 = vld [vmem:[%s4514_s8 + $0x38] sm:$0xff] }
 0x3fa   :  { %3578 = vmatpush3.bf16.msra.mxu0 %v4155_v42  ;;  %3215 = vmatprep.mubr.msk.f32.mxu0 %vm3901_vm0, %v3900_v0  ;;  %v3706_v47 = vpack.c.bf16 %v2508_v46, %v2507_v44 }
 0x3fb   :  { %3579 = vmatprep.subr.bf16.mxu0 %v3902_v16 }
 0x3fe   :  { %v3755_v55 = vpop.eup %3754  ;;  %3581 = vmatpush3.bf16.msra.mxu0 %v4159_v45 }
 0x3ff   :  { %3159 = vmatmul.mubr.msk.f32.vlgmr.msra.gmra.mrb[18].mxu1 %vm737_vm4, %v3755_v55  ;;  %3582 = vmatprep.subr.bf16.mxu0 %v3902_v16 }
 0x400   :  { %3566 = vmatpush3.bf16.msra.mxu1 %v4059_v15  ;;  %3196 = vmatprep.mubr.msk.f32.mxu1 %vm3901_vm0, %v3900_v0 }
 0x401   :  { %3567 = vmatprep.subr.bf16.mxu1 %v3902_v16 }
 0x402   :  { %3584 = vmatpush3.bf16.msra.mxu0 %v4163_v48 }
 0x403   :  { %3585 = vmatprep.subr.bf16.mxu0 %v3902_v16 }
 0x404   :  { %3569 = vmatpush3.bf16.msra.mxu1 %v4080_v22 }
 0x405   :  { %3570 = vmatprep.subr.bf16.mxu1 %v3902_v16 }
 0x406   :  { %3587 = vmatpush3.bf16.msra.mxu0 %v4167_v51 }
 0x407   :  { %3600 = vmatprep.subr.bf16.mxu0 %v3902_v16 }
 0x408   :  { %3572 = vmatpush3.bf16.msra.mxu1 %v4101_v28 }
 0x409   :  { %3573 = vmatprep.subr.bf16.mxu1 %v3902_v16 }
 0x40c   :  { %3575 = vmatpush3.bf16.msra.mxu1 %v4120_v34 }
 0x40d   :  { %3588 = vmatprep.subr.bf16.mxu1 %v3902_v16 }
 0x4bc   :  { %v1542_v56 = vpop.f32.mrb[0].mxu0 }
 0x4bd   :  { %v3714_v58 = vadd.f32 %v4187_v57, %v1542_v56  ;;  %v3141_v59 = vpop.f32.mrb[1].mxu0 }
 0x4bf   :  { %3756 = vtanh.f32 %v3714_v58  ;;  %v2650_v58 = vld [vmem:[#allocation8] ss:$0 sm:$0xff] }
 0x4c9   :  { %v3757_v60 = vpop.eup %3756 }
 0x4ca   :  { %3197 = vmatmul.mubr.msk.f32.vlgmr.msra.gmra.mrb[8].mxu1 %vm737_vm4, %v3757_v60 }
 0x4cb   :  { %3590 = vmatpush3.bf16.msra.mxu1 %v4196_v1  ;;  %3234 = vmatprep.mubr.msk.f32.mxu1 %vm3901_vm0, %v3900_v0 }
 0x4cc   :  { %v1687_v61 = vpop.f32.mrb[14].mxu0  ;;  %3591 = vmatprep.subr.bf16.mxu1 %v3902_v16 }
 0x4cd   :  { %v3179_v62 = vpop.f32.mrb[15].mxu0 }
 0x4cf   :  { %3593 = vmatpush3.bf16.msra.mxu1 %v4206_v5 }
 0x4d0   :  { %3594 = vmatprep.subr.bf16.mxu1 %v3902_v16 }
 0x4d2   :  { %v1617_v63 = vpop.f32.mrb[18].mxu1 }
 0x4d3   :  { %v1688_v2 = vadd.f32 %v1687_v61, %v1617_v63  ;;  %v3160_v3 = vpop.f32.mrb[19].mxu1  ;;  %3596 = vmatpush3.bf16.msra.mxu1 %v4218_v8 }
 0x4d4   :  { %3597 = vmatprep.subr.bf16.mxu1 %v3902_v16 }
 0x4d5   :  { %v1691_v4 = vadd.f32 %v4252_v20, %v1688_v2 }
 0x4d7   :  { %3758 = vtanh.f32 %v1691_v4  ;;  %3599 = vmatpush3.bf16.msra.mxu1 %v4228_v11 }
 0x4d8   :  { %3612 = vmatprep.subr.bf16.mxu1 %v3902_v16 }
 0x4da   :  { %3235 = vmatmul.mubr.msk.f32.vlgmr.msra.gmra.mrb[20].mxu1 %vm737_vm4, %v3757_v60 }
 0x4db   :  { %3614 = vmatpush3.bf16.msra.mxu1 %v4155_v42  ;;  %3272 = vmatprep.mubr.msk.f32.mxu1 %vm3901_vm0, %v3900_v0 }
 0x4dc   :  { %3615 = vmatprep.subr.bf16.mxu1 %v3902_v16 }
 0x4df   :  { %3617 = vmatpush3.bf16.msra.mxu1 %v4159_v45 }
 0x4e0   :  { %3618 = vmatprep.subr.bf16.mxu1 %v3902_v16 }
 0x4e1   :  { %v3759_v6 = vpop.eup %3758 }
 0x4e2   :  { %3216 = vmatmul.mubr.msk.f32.vlgmr.msra.gmra.mrb[16].mxu0 %vm737_vm4, %v3759_v6 }
 0x4e3   :  { %3602 = vmatpush3.bf16.msra.mxu0 %v4059_v15  ;;  %3253 = vmatprep.mubr.msk.f32.mxu0 %vm3901_vm0, %v3900_v0 }
 0x4e4   :  { %3603 = vmatprep.subr.bf16.mxu0 %v3902_v16  ;;  %3620 = vmatpush3.bf16.msra.mxu1 %v4163_v48 }
 0x4e5   :  { %3621 = vmatprep.subr.bf16.mxu1 %v3902_v16 }
 0x4e7   :  { %3605 = vmatpush3.bf16.msra.mxu0 %v4080_v22 }
 0x4e8   :  { %3606 = vmatprep.subr.bf16.mxu0 %v3902_v16  ;;  %3623 = vmatpush3.bf16.msra.mxu1 %v4167_v51 }
 0x4e9   :  { %3636 = vmatprep.subr.bf16.mxu1 %v3902_v16 }
 0x4eb   :  { %3608 = vmatpush3.bf16.msra.mxu0 %v4101_v28 }
 0x4ec   :  { %3609 = vmatprep.subr.bf16.mxu0 %v3902_v16 }
 0x4ef   :  { %3611 = vmatpush3.bf16.msra.mxu0 %v4120_v34 }
 0x4f0   :  { %3624 = vmatprep.subr.bf16.mxu0 %v3902_v16 }
 0x59d   :  { %v1762_v7 = vpop.f32.mrb[8].mxu1 }
 0x59e   :  { %v3715_v9 = vadd.f32 %v4187_v57, %v1762_v7  ;;  %v3198_v10 = vpop.f32.mrb[9].mxu1 }
 0x5a0   :  { %3760 = vtanh.f32 %v3715_v9 }
 0x5aa   :  { %v3761_v12 = vpop.eup %3760 }
 0x5ab   :  { %3254 = vmatmul.mubr.msk.f32.vlgmr.msra.gmra.mrb[2].mxu0 %vm737_vm4, %v3761_v12 }
 0x5ac   :  { %3626 = vmatpush3.bf16.msra.mxu0 %v4196_v1  ;;  %3291 = vmatprep.mubr.msk.f32.mxu0 %vm3901_vm0, %v3900_v0 }
 0x5ad   :  { %v1907_v13 = vpop.f32.mrb[20].mxu1  ;;  %3627 = vmatprep.subr.bf16.mxu0 %v3902_v16 }
 0x5ae   :  { %v3236_v14 = vpop.f32.mrb[21].mxu1 }
 0x5b0   :  { %3629 = vmatpush3.bf16.msra.mxu0 %v4206_v5 }
 0x5b1   :  { %3630 = vmatprep.subr.bf16.mxu0 %v3902_v16 }
 0x5b4   :  { %3632 = vmatpush3.bf16.msra.mxu0 %v4218_v8 }
 0x5b5   :  { %v1837_v17 = vpop.f32.mrb[16].mxu0  ;;  %3633 = vmatprep.subr.bf16.mxu0 %v3902_v16 }
 0x5b6   :  { %v1908_v18 = vadd.f32 %v1907_v13, %v1837_v17  ;;  %v3217_v19 = vpop.f32.mrb[17].mxu0 }
 0x5b8   :  { %v1911_v21 = vadd.f32 %v4252_v20, %v1908_v18  ;;  %3635 = vmatpush3.bf16.msra.mxu0 %v4228_v11 }
 0x5b9   :  { %3648 = vmatprep.subr.bf16.mxu0 %v3902_v16 }
 0x5ba   :  { %3762 = vtanh.f32 %v1911_v21 }
 0x5bb   :  { %3292 = vmatmul.mubr.msk.f32.vlgmr.msra.gmra.mrb[18].mxu0 %vm737_vm4, %v3761_v12 }
 0x5bc   :  { %3650 = vmatpush3.bf16.msra.mxu0 %v4155_v42  ;;  %3329 = vmatprep.mubr.msk.f32.mxu0 %vm3901_vm0, %v3900_v0 }
 0x5bd   :  { %3651 = vmatprep.subr.bf16.mxu0 %v3902_v16 }
 0x5c0   :  { %3653 = vmatpush3.bf16.msra.mxu0 %v4159_v45 }
 0x5c1   :  { %3654 = vmatprep.subr.bf16.mxu0 %v3902_v16 }
 0x5c4   :  { %v3763_v23 = vpop.eup %3762  ;;  %3656 = vmatpush3.bf16.msra.mxu0 %v4163_v48 }
 0x5c5   :  { %3273 = vmatmul.mubr.msk.f32.vlgmr.msra.gmra.mrb[22].mxu1 %vm737_vm4, %v3763_v23  ;;  %3657 = vmatprep.subr.bf16.mxu0 %v3902_v16 }
 0x5c6   :  { %3638 = vmatpush3.bf16.msra.mxu1 %v4059_v15  ;;  %3310 = vmatprep.mubr.msk.f32.mxu1 %vm3901_vm0, %v3900_v0 }
 0x5c7   :  { %3639 = vmatprep.subr.bf16.mxu1 %v3902_v16 }
 0x5c8   :  { %3659 = vmatpush3.bf16.msra.mxu0 %v4167_v51 }
 0x5c9   :  { %3672 = vmatprep.subr.bf16.mxu0 %v3902_v16 }
 0x5ca   :  { %3641 = vmatpush3.bf16.msra.mxu1 %v4080_v22 }
 0x5cb   :  { %3642 = vmatprep.subr.bf16.mxu1 %v3902_v16 }
 0x5ce   :  { %3644 = vmatpush3.bf16.msra.mxu1 %v4101_v28 }
 0x5cf   :  { %3645 = vmatprep.subr.bf16.mxu1 %v3902_v16 }
 0x5d2   :  { %3647 = vmatpush3.bf16.msra.mxu1 %v4120_v34 }
 0x5d3   :  { %3660 = vmatprep.subr.bf16.mxu1 %v3902_v16 }
 0x67e   :  { %v1982_v15 = vpop.f32.mrb[2].mxu0 }
 0x67f   :  { %v3716_v24 = vadd.f32 %v4187_v57, %v1982_v15  ;;  %v3255_v25 = vpop.f32.mrb[3].mxu0 }
 0x681   :  { %3764 = vtanh.f32 %v3716_v24 }
 0x68b   :  { %v3765_v26 = vpop.eup %3764 }
 0x68c   :  { %3311 = vmatmul.mubr.msk.f32.vlgmr.msra.gmra.mrb[10].mxu1 %vm737_vm4, %v3765_v26 }
 0x68d   :  { %3662 = vmatpush3.bf16.msra.mxu1 %v4196_v1  ;;  %3348 = vmatprep.mubr.msk.f32.mxu1 %vm3901_vm0, %v3900_v0 }
 0x68e   :  { %v2127_v22 = vpop.f32.mrb[18].mxu0  ;;  %3663 = vmatprep.subr.bf16.mxu1 %v3902_v16 }
 0x68f   :  { %v3293_v28 = vpop.f32.mrb[19].mxu0 }
 0x691   :  { %3665 = vmatpush3.bf16.msra.mxu1 %v4206_v5 }
 0x692   :  { %3666 = vmatprep.subr.bf16.mxu1 %v3902_v16 }
 0x695   :  { %3668 = vmatpush3.bf16.msra.mxu1 %v4218_v8 }
 0x696   :  { %3669 = vmatprep.subr.bf16.mxu1 %v3902_v16 }
 0x698   :  { %v2057_v34 = vpop.f32.mrb[22].mxu1 }
 0x699   :  { %v2128_v27 = vadd.f32 %v2127_v22, %v2057_v34  ;;  %v3274_v29 = vpop.f32.mrb[23].mxu1  ;;  %3671 = vmatpush3.bf16.msra.mxu1 %v4228_v11 }
 0x69a   :  { %3684 = vmatprep.subr.bf16.mxu1 %v3902_v16 }
 0x69b   :  { %v2131_v30 = vadd.f32 %v4252_v20, %v2128_v27 }
 0x69c   :  { %3349 = vmatmul.mubr.msk.f32.vlgmr.msra.gmra.mrb[24].mxu1 %vm737_vm4, %v3765_v26 }
 0x69d   :  { %3766 = vtanh.f32 %v2131_v30  ;;  %3686 = vmatpush3.bf16.msra.mxu1 %v4196_v1  ;;  %3386 = vmatprep.mubr.msk.f32.mxu1 %vm3901_vm0, %v3900_v0 }
 0x69e   :  { %3687 = vmatprep.subr.bf16.mxu1 %v3902_v16 }
 0x6a1   :  { %3689 = vmatpush3.bf16.msra.mxu1 %v4206_v5 }
 0x6a2   :  { %3690 = vmatprep.subr.bf16.mxu1 %v3902_v16 }
 0x6a5   :  { %3692 = vmatpush3.bf16.msra.mxu1 %v4218_v8 }
 0x6a6   :  { %3693 = vmatprep.subr.bf16.mxu1 %v3902_v16 }
 0x6a7   :  { %v3767_v31 = vpop.eup %3766 }
 0x6a8   :  { %3330 = vmatmul.mubr.msk.f32.vlgmr.msra.gmra.mrb[20].mxu0 %vm737_vm4, %v3767_v31 }
 0x6a9   :  { %3695 = vmatpush3.bf16.msra.mxu1 %v4228_v11  ;;  %3674 = vmatpush3.bf16.msra.mxu0 %v4155_v42 }
 0x6aa   :  { %3675 = vmatprep.subr.bf16.mxu0 %v3902_v16  ;;  %3367 = vmatprep.mubr.msk.f32.mxu0 %vm3901_vm0, %v3900_v0 }
 0x6ad   :  { %3677 = vmatpush3.bf16.msra.mxu0 %v4159_v45 }
 0x6ae   :  { %3678 = vmatprep.subr.bf16.mxu0 %v3902_v16 }
 0x6b1   :  { %3680 = vmatpush3.bf16.msra.mxu0 %v4163_v48 }
 0x6b2   :  { %3681 = vmatprep.subr.bf16.mxu0 %v3902_v16 }
 0x6b5   :  { %3683 = vmatpush3.bf16.msra.mxu0 %v4167_v51  ;;  %v2501_v51 = vld [vmem:[%s4514_s8] sm:$0xff] }
 0x6b6   :  { %3696 = vmatprep.subr.bf16.mxu0 %v3902_v16 }
 0x75f   :  { %v2202_v1 = vpop.f32.mrb[10].mxu1 }
 0x760   :  { %v3717_v42 = vadd.f32 %v4187_v57, %v2202_v1  ;;  %v3312_v5 = vpop.f32.mrb[11].mxu1  ;;  %v2502_v57 = vld [vmem:[%s4514_s8 + $0x8] sm:$0xff] }
 0x761   :  { %v3697_v37 = vpack.c.bf16 %v2502_v57, %v2501_v51 }
 0x762   :  { %3768 = vtanh.f32 %v3717_v42 }
 0x76c   :  { %v3769_v8 = vpop.eup %3768 }
 0x76d   :  { %3387 = vmatmul.mubr.msk.f32.vlgmr.msra.gmra.mrb[26].mxu1 %vm737_vm4, %v3769_v8 }
 0x76f   :  { %v2347_v11 = vpop.f32.mrb[24].mxu1 }
 0x770   :  { %v3350_v45 = vpop.f32.mrb[25].mxu1 }
 0x77b   :  { %v2277_v32 = vpop.f32.mrb[20].mxu0 }
 0x77c   :  { %v2348_v33 = vadd.f32 %v2347_v11, %v2277_v32  ;;  %v3331_v35 = vpop.f32.mrb[21].mxu0 }
 0x77e   :  { %v2351_v48 = vadd.f32 %v4252_v20, %v2348_v33 }
 0x780   :  { %3770 = vtanh.f32 %v2351_v48 }
 0x78a   :  { %v3771_v36 = vpop.eup %3770 }
 0x78b   :  { %3368 = vmatmul.mubr.msk.f32.vlgmr.msra.gmra.mrb[22].mxu0 %vm737_vm4, %v3771_v36 }
 0x78c   :  { %3405 = vmatprep.mubr.msk.f32.mxu0 %vm3901_vm0, %v3900_v0  ;;  %3698 = vmatpush3.bf16.msra.mxu0 %v3697_v37  ;;  %v2504_v0 = vld [vmem:[%s4514_s8 + $0x18] sm:$0xff]  ;;  %s3862_s8 = scalar_lea.vmem %s2598_s6, 32 }
 0x78d   :  { %3699 = vmatprep.subr.bf16.mxu0 %v3902_v16  ;;  %v3700_v39 = vpack.c.bf16 %v2504_v0, %v2503_v38  ;;  %p3863_p4 = scmp.ne.s32.totalorder %s2598_s6, %s3862_s8  ;;  %p3868_p6 = scmp.lt.s32.totalorder %s3862_s8, %s3862_s8 }
 0x78f   :  { %p3869_p7 = por %p3868_p6, %p3867_p5 }
 0x790   :  { %3701 = vmatpush3.bf16.msra.mxu0 %v3700_v39 }
 0x791   :  { %3702 = vmatprep.subr.bf16.mxu0 %v3902_v16  ;;  %p3870_p8 = pnand %p3869_p7, %p3863_p4 }
 0x794   :  { %3704 = vmatpush3.bf16.msra.mxu0 %v3703_v43 }
 0x795   :  { %3705 = vmatprep.subr.bf16.mxu0 %v3902_v16 }
 0x798   :  { %3707 = vmatpush3.bf16.msra.mxu0 %v3706_v47 }
 0x840   :  { %v2495_v49 = vpop.f32.mrb[26].mxu1 }
 0x841   :  { %v3388_v50 = vpop.f32.mrb[27].mxu1 }
 0x85e   :  { %v2422_v52 = vpop.f32.mrb[22].mxu0 }
 0x85f   :  { %v2496_v53 = vadd.f32 %v2495_v49, %v2422_v52  ;;  %v3369_v54 = vpop.f32.mrb[23].mxu0 }
 0x861   :  { %v2499_v55 = vadd.f32 %v4252_v20, %v2496_v53 }
 0x863   :  { %3772 = vtanh.f32 %v2499_v55 }
 0x86d   :  { %v3773_v56 = vpop.eup %3772 }
 0x86e   :  { %3406 = vmatmul.mubr.msk.f32.vlgmr.msra.gmra.mrb[24].mxu0 %vm737_vm4, %v3773_v56 }
 0x941   :  { %v2585_v59 = vpop.f32.mrb[24].mxu0 }
 0x942   :  { %v2586_v60 = vadd.f32 %v2650_v58, %v2585_v59  ;;  %v3407_v61 = vpop.f32.mrb[25].mxu0 }
 0x944   :  { %2590 = vst.msk [vmem:[#allocation10] sm:$0x3] %vm2589_vm5, %v2586_v60 }
 0x945   :  { %3873 = shalt.err (!%p3870_p8)
}
 0x946   :  { %s3874_s0 = scalar_lea.hbm %s4516_s10, 32 }
 0x947   :  { %p3875_p9 = scmp.ne.s32.totalorder %s4516_s10, %s3874_s0  ;;  %p3878_p10 = scmp.lt.u32.totalorder %s3874_s0, %s4516_s10 }
 0x949   :  { %p3880_p11 = pnand %p3878_p10, %p3875_p9 }
 0x94b   :  { %3883 = shalt.err (!%p3880_p11)
}
 0x94c   :  { %2600 = dma.vmem_to_hbm [thread:$0]  %s2598_s6, 32, %s4516_s10, [#allocation4]  }
 0x94d   :  { %3890 = dma.done.wait [#allocation4], 32  }
 0x94e   :  { %3891 = vsyncadd [#allocation4], 4294967264 }
 0x94f   :  { %2604 = vsyncpa [#allocation3], 1 }
 0x950   :  { %2605 = vsyncpa [#allocation6], 1 }
 0x951   :  { %2606 = vsyncpa [#allocation9], 1 }
 0x952   :  { %2607 = vsyncpa [#allocation4], 1 }

</bundles_post_ra>
